<compile_context>
chip_gen: v5e
topology: v5e:2x2
jax: 0.10.0
libtpu: 0.0.40
codegen_flags: <defaults>
</compile_context>

<pallas_src>
import jax
import jax.numpy as jnp
from jax.experimental import pallas as pl
from jax.experimental.pallas import tpu as pltpu


def _bahdanau_attn_kernel(q_ref, k_ref, wa_ref, ua_ref, va_ref, b_ref,
                          ctx_ref, wts_ref):
    # q_ref  : (TB, H)      query rows for this batch block
    # k_ref  : (TB, S, H)   keys for this batch block
    # wa_ref : (H, H)       Wa.weight pre-transposed -> (in, out)
    # ua_ref : (H, H)       Ua.weight pre-transposed -> (in, out)
    # va_ref : (1, H)       Va.weight as a row vector
    # b_ref  : (1, H)       combined bias (Wa.bias + Ua.bias)
    # ctx_ref: (TB, H)      context output (time dim added back in wrapper)
    # wts_ref: (TB, S)      attention-weights output
    tb, s, h = k_ref.shape

    q = q_ref[...]                                            # (TB, H) f32
    k = k_ref[...]                                            # (TB, S, H) f32

    # Wa(query) + (b_wa + b_ua): (TB, H) @ (H, H) on the MXU, one bias add.
    wq = jnp.dot(q, wa_ref[...],
                 preferred_element_type=jnp.float32) + b_ref[...]

    # Ua(keys): flatten (batch, seq) so the MXU sees (TB*S, H) @ (H, H).
    uk = jnp.dot(k.reshape(tb * s, h), ua_ref[...],
                 preferred_element_type=jnp.float32).reshape(tb, s, h)

    # tanh(Wa(q) + Ua(k)) — EUP tanh; query term broadcast over the seq axis.
    t = jnp.tanh(uk + wq[:, None, :])                         # (TB, S, H)

    # Va(.): single output column -> VPU multiply + XLU lane-reduce instead of
    # an N=1 MXU matmul.  Va's bias is omitted: softmax is shift-invariant, so
    # it has no effect on the kernel outputs.
    scores = jnp.sum(t * va_ref[...][None, :, :], axis=-1)    # (TB, S)

    # Row softmax over S: max-subtracted exp, EUP approx reciprocal for denom.
    m = jnp.max(scores, axis=-1, keepdims=True)
    e = jnp.exp(scores - m)
    denom = jnp.sum(e, axis=-1, keepdims=True)
    wts = e * pl.reciprocal(denom, approx=True)               # (TB, S)

    # context[b] = weights[b] @ keys[b] as a weighted sublane reduce (keeps the
    # MXU free; a batched (1,S)@(S,H) bmm would be M=1 per batch row).
    ctx = jnp.sum(wts[:, :, None] * k, axis=1)                # (TB, H)

    ctx_ref[...] = ctx.astype(ctx_ref.dtype)
    wts_ref[...] = wts.astype(wts_ref.dtype)


def _choose_block_b(B, S, H, dtype_bytes=4, budget_bytes=12 * 1024 * 1024):
    """Pick a batch block size that keeps double-buffered blocks in VMEM."""
    per_b = 2 * dtype_bytes * (S * H + 2 * H + S)   # 2x: pipeline double buffer
    tb = max(1, min(B, 256, budget_bytes // max(per_b, 1)))
    if B <= tb:
        return B                                    # single full-batch block
    # Block's leading dim sits on sublanes for the 2-D arrays: keep it 8-aligned.
    return 8 if tb < 8 else (tb // 8) * 8


def bahdanau_attention(query, keys, wa_w, wa_b, ua_w, ua_b, va_w, va_b,
                       *, block_b=None):
    """query: (B,1,H), keys: (B,S,H); weights follow nn.Linear conventions
    (Wa/Ua: (H,H) row=out, Va: (1,H)).  Returns (context (B,1,H), weights (B,1,S)).
    Note: va_b does not affect the outputs (softmax shift invariance)."""
    del va_b  # shift-invariant under softmax; see note above
    B, one, H = query.shape
    assert one == 1, "query is expected to be (B, 1, H)"
    _, S, Hk = keys.shape
    assert Hk == H

    tb = block_b if block_b is not None else _choose_block_b(B, S, H)
    grid = (pl.cdiv(B, tb),)

    # Squeeze the singleton time dim so inputs/outputs are lane/sublane-dense 2-D.
    q2 = query.reshape(B, H)
    # Pre-transpose weights once in the wrapper: (out, in) -> (in, out) so the
    # kernel contracts LHS-last vs RHS-first with no in-kernel transpose.
    wa_t, ua_t = wa_w.T, ua_w.T                     # (H, H), (H, H)
    va_row = va_w.reshape(1, H)                     # Va as a row vector
    bias = (wa_b + ua_b).reshape(1, H)              # single combined bias

    # Size the scoped VMEM limit from the actual block footprint (headroom kept
    # for v7x's 64 MiB physical VMEM).
    elt = jnp.dtype(query.dtype).itemsize
    est = elt * (2 * tb * (S * H + 2 * H + S) + 2 * H * H + 2 * H)
    vmem_limit = int(min(max(2 * est, 16 * 1024 * 1024), 40 * 1024 * 1024))

    ctx, wts = pl.pallas_call(
        _bahdanau_attn_kernel,
        out_shape=(
            jax.ShapeDtypeStruct((B, H), query.dtype),   # context (time dim later)
            jax.ShapeDtypeStruct((B, S), query.dtype),   # attention weights
        ),
        grid_spec=pltpu.PrefetchScalarGridSpec(
            num_scalar_prefetch=0,
            grid=grid,
            in_specs=[
                pl.BlockSpec((tb, H), lambda b: (b, 0)),        # query block
                pl.BlockSpec((tb, S, H), lambda b: (b, 0, 0)),  # keys block
                pl.BlockSpec((H, H), lambda b: (0, 0)),         # Wa^T (shared)
                pl.BlockSpec((H, H), lambda b: (0, 0)),         # Ua^T (shared)
                pl.BlockSpec((1, H), lambda b: (0, 0)),         # Va row (shared)
                pl.BlockSpec((1, H), lambda b: (0, 0)),         # combined bias
            ],
            out_specs=[
                pl.BlockSpec((tb, H), lambda b: (b, 0)),        # context block
                pl.BlockSpec((tb, S), lambda b: (b, 0)),        # weights block
            ],
        ),
        compiler_params=pltpu.CompilerParams(
            dimension_semantics=("parallel",),
            vmem_limit_bytes=vmem_limit),
    )(q2, keys, wa_t, ua_t, va_row, bias)

    # Restore the PyTorch module's output shapes.
    return ctx.reshape(B, 1, H), wts.reshape(B, 1, S)


def _reference(query, keys, wa_w, wa_b, ua_w, ua_b, va_w, va_b):
    wq = jnp.einsum("bth,oh->bto", query, wa_w) + wa_b               # (B,1,H)
    uk = jnp.einsum("bsh,oh->bso", keys, ua_w) + ua_b                # (B,S,H)
    sc = jnp.einsum("bsh,oh->bso", jnp.tanh(wq + uk), va_w) + va_b   # (B,S,1)
    sc = jnp.transpose(sc, (0, 2, 1))                                # (B,1,S)
    wts = jax.nn.softmax(sc, axis=-1)
    ctx = jnp.einsum("bqs,bsh->bqh", wts, keys)                      # (B,1,H)
    return ctx, wts


if __name__ == "__main__":
    B, S, H = 2, 8, 32
    key = jax.random.PRNGKey(0)
    kq, kk, k1, k2, k3, k4, k5, k6 = jax.random.split(key, 8)

    query = jax.random.normal(kq, (B, 1, H), dtype=jnp.float32)
    keys = jax.random.normal(kk, (B, S, H), dtype=jnp.float32)

    # Deterministic stand-ins for nn.Linear params (PyTorch-style uniform init).
    bound = 1.0 / (H ** 0.5)

    def uni(k, shape):
        return jax.random.uniform(k, shape, jnp.float32, -bound, bound)

    wa_w, wa_b = uni(k1, (H, H)), uni(k2, (H,))
    ua_w, ua_b = uni(k3, (H, H)), uni(k4, (H,))
    va_w, va_b = uni(k5, (1, H)), uni(k6, (1,))

    ctx, wts = bahdanau_attention(query, keys, wa_w, wa_b, ua_w, ua_b, va_w, va_b)
    jax.block_until_ready((ctx, wts))

    ref_ctx, ref_wts = _reference(query, keys, wa_w, wa_b, ua_w, ua_b, va_w, va_b)
    assert ctx.shape == (B, 1, H) and wts.shape == (B, 1, S)
    # Tolerances loosened slightly for the approx-reciprocal softmax denominator.
    assert jnp.allclose(ctx, ref_ctx, atol=2e-3, rtol=2e-3), \
        float(jnp.max(jnp.abs(ctx - ref_ctx)))
    assert jnp.allclose(wts, ref_wts, atol=2e-3, rtol=2e-3), \
        float(jnp.max(jnp.abs(wts - ref_wts)))

    print("KERNEL_OK")
</pallas_src>

<mosaic_0001>
module attributes {stable_mosaic.version = 11 : i64} {
  func.func @_bahdanau_attn_kernel(%arg0: i32, %arg1: memref<2x32xf32, #tpu.memory_space<vmem>>, %arg2: memref<2x8x32xf32, #tpu.memory_space<vmem>>, %arg3: memref<32x32xf32, #tpu.memory_space<vmem>>, %arg4: memref<32x32xf32, #tpu.memory_space<vmem>>, %arg5: memref<1x32xf32, #tpu.memory_space<vmem>>, %arg6: memref<1x32xf32, #tpu.memory_space<vmem>>, %arg7: memref<2x32xf32, #tpu.memory_space<vmem>>, %arg8: memref<2x8xf32, #tpu.memory_space<vmem>>) attributes {dimension_semantics = [#tpu.dimension_semantics<parallel>], iteration_bounds = array<i64: 1>, scalar_prefetch = 0 : i64, scratch_operands = 0 : i64, tpu.core_type = #tpu.core_type<tc>, window_params = [{transform_indices = @transform_0, window_bounds = array<i64: 2, 32>}, {transform_indices = @transform_1, window_bounds = array<i64: 2, 8, 32>}, {pipeline_mode = #tpu.pipeline_mode<synchronous>, transform_indices = @transform_2, window_bounds = array<i64: 32, 32>}, {pipeline_mode = #tpu.pipeline_mode<synchronous>, transform_indices = @transform_3, window_bounds = array<i64: 32, 32>}, {pipeline_mode = #tpu.pipeline_mode<synchronous>, transform_indices = @transform_4, window_bounds = array<i64: 1, 32>}, {pipeline_mode = #tpu.pipeline_mode<synchronous>, transform_indices = @transform_5, window_bounds = array<i64: 1, 32>}, {transform_indices = @transform_6, window_bounds = array<i64: 2, 32>}, {transform_indices = @transform_7, window_bounds = array<i64: 2, 8>}]} {
    %c0 = arith.constant 0 : index
    %c0_0 = arith.constant 0 : index
    %0 = vector.load %arg1[%c0, %c0_0] : memref<2x32xf32, #tpu.memory_space<vmem>>, vector<2x32xf32>
    %c0_1 = arith.constant 0 : index
    %c0_2 = arith.constant 0 : index
    %c0_3 = arith.constant 0 : index
    %1 = vector.load %arg2[%c0_1, %c0_2, %c0_3] : memref<2x8x32xf32, #tpu.memory_space<vmem>>, vector<2x8x32xf32>
    %c0_4 = arith.constant 0 : index
    %c0_5 = arith.constant 0 : index
    %2 = vector.load %arg3[%c0_4, %c0_5] : memref<32x32xf32, #tpu.memory_space<vmem>>, vector<32x32xf32>
    %cst = arith.constant dense<0.000000e+00> : vector<2x32xf32>
    %3 = tpu.matmul %0, %2, %cst {dimension_numbers = #tpu.dot_dimension_numbers<[1], [0], [0], [1], [0, 0, 1, 1], [], []>} : vector<2x32xf32>, vector<32x32xf32>, vector<2x32xf32> -> vector<2x32xf32>
    %c0_6 = arith.constant 0 : index
    %c0_7 = arith.constant 0 : index
    %4 = vector.load %arg6[%c0_6, %c0_7] : memref<1x32xf32, #tpu.memory_space<vmem>>, vector<1x32xf32>
    %5 = vector.broadcast %4 : vector<1x32xf32> to vector<2x32xf32>
    %6 = arith.addf %3, %5 : vector<2x32xf32>
    %7 = vector.shape_cast %1 : vector<2x8x32xf32> to vector<16x32xf32>
    %c0_8 = arith.constant 0 : index
    %c0_9 = arith.constant 0 : index
    %8 = vector.load %arg4[%c0_8, %c0_9] : memref<32x32xf32, #tpu.memory_space<vmem>>, vector<32x32xf32>
    %cst_10 = arith.constant dense<0.000000e+00> : vector<16x32xf32>
    %9 = tpu.matmul %7, %8, %cst_10 {dimension_numbers = #tpu.dot_dimension_numbers<[1], [0], [0], [1], [0, 0, 1, 1], [], []>} : vector<16x32xf32>, vector<32x32xf32>, vector<16x32xf32> -> vector<16x32xf32>
    %10 = vector.shape_cast %9 : vector<16x32xf32> to vector<2x8x32xf32>
    %11 = vector.shape_cast %6 : vector<2x32xf32> to vector<2x1x32xf32>
    %12 = vector.broadcast %11 : vector<2x1x32xf32> to vector<2x8x32xf32>
    %13 = arith.addf %10, %12 : vector<2x8x32xf32>
    %14 = math.tanh %13 : vector<2x8x32xf32>
    %c0_11 = arith.constant 0 : index
    %c0_12 = arith.constant 0 : index
    %15 = vector.load %arg5[%c0_11, %c0_12] : memref<1x32xf32, #tpu.memory_space<vmem>>, vector<1x32xf32>
    %16 = vector.shape_cast %15 : vector<1x32xf32> to vector<1x1x32xf32>
    %17 = vector.broadcast %16 : vector<1x1x32xf32> to vector<2x8x32xf32>
    %18 = arith.mulf %14, %17 : vector<2x8x32xf32>
    %cst_13 = arith.constant dense<0.000000e+00> : vector<2x8xf32>
    %19 = vector.multi_reduction <add>, %18, %cst_13 [2] : vector<2x8x32xf32> to vector<2x8xf32>
    %cst_14 = arith.constant dense<0xFF800000> : vector<2xf32>
    %20 = vector.multi_reduction <maximumf>, %19, %cst_14 [1] : vector<2x8xf32> to vector<2xf32>
    %21 = vector.shape_cast %20 : vector<2xf32> to vector<2x1xf32>
    %22 = vector.broadcast %21 : vector<2x1xf32> to vector<2x8xf32>
    %23 = arith.subf %19, %22 : vector<2x8xf32>
    %24 = math.exp %23 : vector<2x8xf32>
    %cst_15 = arith.constant dense<0.000000e+00> : vector<2xf32>
    %25 = vector.multi_reduction <add>, %24, %cst_15 [1] : vector<2x8xf32> to vector<2xf32>
    %26 = vector.shape_cast %25 : vector<2xf32> to vector<2x1xf32>
    %27 = tpu.reciprocal %26 {approx = true} : vector<2x1xf32> -> vector<2x1xf32>
    %28 = vector.broadcast %27 : vector<2x1xf32> to vector<2x8xf32>
    %29 = arith.mulf %24, %28 : vector<2x8xf32>
    %30 = vector.shape_cast %29 : vector<2x8xf32> to vector<2x8x1xf32>
    %31 = vector.broadcast %30 : vector<2x8x1xf32> to vector<2x8x32xf32>
    %32 = arith.mulf %31, %1 : vector<2x8x32xf32>
    %cst_16 = arith.constant dense<0.000000e+00> : vector<2x32xf32>
    %33 = vector.multi_reduction <add>, %32, %cst_16 [1] : vector<2x8x32xf32> to vector<2x32xf32>
    %c0_17 = arith.constant 0 : index
    %c0_18 = arith.constant 0 : index
    %34 = vector.load %arg7[%c0_17, %c0_18] : memref<2x32xf32, #tpu.memory_space<vmem>>, vector<2x32xf32>
    tpu.vector_store %arg7[%c0_17, %c0_18], %33 {strides = array<i32>} : memref<2x32xf32, #tpu.memory_space<vmem>>, vector<2x32xf32>,
    %c0_19 = arith.constant 0 : index
    %c0_20 = arith.constant 0 : index
    %35 = vector.load %arg8[%c0_19, %c0_20] : memref<2x8xf32, #tpu.memory_space<vmem>>, vector<2x8xf32>
    tpu.vector_store %arg8[%c0_19, %c0_20], %29 {strides = array<i32>} : memref<2x8xf32, #tpu.memory_space<vmem>>, vector<2x8xf32>,
    return
  }
  func.func @transform_0(%arg0: i32) -> (i32, i32) {
    %c0_i32 = arith.constant 0 : i32
    %c0_i32_0 = arith.constant 0 : i32
    return %arg0, %c0_i32 : i32, i32
  }
  func.func @transform_1(%arg0: i32) -> (i32, i32, i32) {
    %c0_i32 = arith.constant 0 : i32
    %c0_i32_0 = arith.constant 0 : i32
    %c0_i32_1 = arith.constant 0 : i32
    return %arg0, %c0_i32, %c0_i32_0 : i32, i32, i32
  }
  func.func @transform_2(%arg0: i32) -> (i32, i32) {
    %c0_i32 = arith.constant 0 : i32
    %c0_i32_0 = arith.constant 0 : i32
    %c0_i32_1 = arith.constant 0 : i32
    return %c0_i32, %c0_i32_0 : i32, i32
  }
  func.func @transform_3(%arg0: i32) -> (i32, i32) {
    %c0_i32 = arith.constant 0 : i32
    %c0_i32_0 = arith.constant 0 : i32
    %c0_i32_1 = arith.constant 0 : i32
    return %c0_i32, %c0_i32_0 : i32, i32
  }
  func.func @transform_4(%arg0: i32) -> (i32, i32) {
    %c0_i32 = arith.constant 0 : i32
    %c0_i32_0 = arith.constant 0 : i32
    %c0_i32_1 = arith.constant 0 : i32
    return %c0_i32, %c0_i32_0 : i32, i32
  }
  func.func @transform_5(%arg0: i32) -> (i32, i32) {
    %c0_i32 = arith.constant 0 : i32
    %c0_i32_0 = arith.constant 0 : i32
    %c0_i32_1 = arith.constant 0 : i32
    return %c0_i32, %c0_i32_0 : i32, i32
  }
  func.func @transform_6(%arg0: i32) -> (i32, i32) {
    %c0_i32 = arith.constant 0 : i32
    %c0_i32_0 = arith.constant 0 : i32
    return %arg0, %c0_i32 : i32, i32
  }
  func.func @transform_7(%arg0: i32) -> (i32, i32) {
    %c0_i32 = arith.constant 0 : i32
    %c0_i32_0 = arith.constant 0 : i32
    return %arg0, %c0_i32 : i32, i32
  }
}

</mosaic_0001>

<bundles_post_ra>
// kernel: tpu_custom_call.1
= control target key start
LH: loop header
LB: loop body
LE: loop exit
PB: predicated region body
PF: predicated region fallthrough
CT: control target
= control target key end

     0   :  { %13 = vsyncpa [#allocation3], 0  ;;  %s577_s0 = inlined_call_operand.hbm [shape: f32[2,32], index: 0, kind: input, shape index: {}]   ;;  %s578_s1 = inlined_call_operand.hbm [shape: f32[2,8,32], index: 1, kind: input, shape index: {}]   ;;  %s579_s2 = inlined_call_operand.hbm [shape: f32[32,32], index: 2, kind: input, shape index: {}]   ;;  %s580_s3 = inlined_call_operand.hbm [shape: f32[32,32], index: 3, kind: input, shape index: {}]   ;;  %s581_s4 = inlined_call_operand.vmem [shape: f32[1,32], index: 4, kind: input, shape index: {}]   ;;  %s582_s5 = inlined_call_operand.vmem [shape: f32[1,32], index: 5, kind: input, shape index: {}]   ;;  %s583_s6 = inlined_call_operand.hbm [shape: f32[2,32], index: 6, kind: output, shape index: {0}]   ;;  %s584_s7 = inlined_call_operand.hbm [shape: f32[2,8], index: 7, kind: output, shape index: {1}]  }
   0x1   :  { %14 = vsyncpa [#allocation6], 0 }
   0x2   :  { %15 = vsyncpa [#allocation9], 0 }
   0x3   :  { %16 = vsyncpa [#allocation4], 0  ;;  %s33_s26 = sshll.u32 %s578_s1, 4  ;;  %s34_s26 = int_to_ptr.hbm [resolvable:$true] %s33_s26 }
   0x4   :  { %17 = vsyncpa [#allocation12], 0  ;;  %s482_s27 = smov [#allocation5]   ;;  %s23_s8 = sshll.u32 %s577_s0, 4  ;;  %s24_s8 = int_to_ptr.hbm [resolvable:$true] %s23_s8 }
   0x5   :  { %s35_s28 = sshll.u32 %s482_s27, 4  ;;  %s483_s9 = smov 128   ;;  %s36_s28 = int_to_ptr.vmem [resolvable:$true] %s35_s28 }
   0x6   :  { %s484_s10 = smov 8   ;;  %s485_s11 = smov [#allocation2]  }
   0x7   :  { %41 = dma.hbm_to_vmem [thread:$0]  %s34_s26, 256, %s36_s28, [#allocation6], %s483_s9, %s483_s9, %s484_s10  }
   0x8   :  { %s25_s12 = sshll.u32 %s485_s11, 4  ;;  %s46_s15 = sshll.u32 %s579_s2, 4  ;;  %s26_s12 = int_to_ptr.vmem [resolvable:$true] %s25_s12  ;;  %s47_s15 = int_to_ptr.hbm [resolvable:$true] %s46_s15 }
   0x9   :  { %28 = dma.hbm_to_vmem [thread:$0]  %s24_s8, 32, %s26_s12, [#allocation3]  }
   0xa   :  { %s59_s17 = sshll.u32 %s580_s3, 4  ;;  %s486_s18 = smov [#allocation7]   ;;  %s60_s17 = int_to_ptr.hbm [resolvable:$true] %s59_s17 }
   0xb   :  { %s48_s19 = sshll.u32 %s486_s18, 4  ;;  %s487_s0 = smov [#allocation8]   ;;  %s49_s19 = int_to_ptr.vmem [resolvable:$true] %s48_s19 }
   0xc   :  { %54 = dma.hbm_to_vmem [thread:$0]  %s47_s15, 512, %s49_s19, [#allocation6], %s483_s9, %s483_s9, %s484_s10  }
   0xd   :  { %s61_s20 = sshll.u32 %s487_s0, 4  ;;  %s62_s20 = int_to_ptr.vmem [resolvable:$true] %s61_s20 }
   0xe   :  { %67 = dma.hbm_to_vmem [thread:$0]  %s60_s17, 512, %s62_s20, [#allocation9], %s483_s9, %s483_s9, %s484_s10  }
   0xf   :  { %472 = dma.done.wait [#allocation3], 32  }
  0x10   :  { %473 = vsyncadd [#allocation3], 4294967264 }
  0x11   :  { %474 = dma.done.wait [#allocation6], 768  }
  0x12   :  { %475 = vsyncadd [#allocation6], 4294966528 }
  0x13   :  { %476 = dma.done.wait [#allocation9], 512  }
  0x14   :  { %477 = vsyncadd [#allocation9], 4294966784  ;;  %v94_v0 = vld [vmem:[#allocation7 + $0x18] sm:$0xff]  ;;  %v93_v2 = vld [vmem:[#allocation7 + $0x10] sm:$0xff]  ;;  %vm99_vm0 = vcmask 261120   ;;  %v180_v29 = vlaneseq  ;;  %vm184_vm1 = vcmask 1041409  }
  0x15   :  { %v126_v1 = vld [vmem:[#allocation8 + $0x18] sm:$0xff]  ;;  %115 = vmatpush.msra.mxu0 %v94_v0  ;;  %v125_v3 = vld [vmem:[#allocation8 + $0x10] sm:$0xff]  ;;  %v92_v4 = vld [vmem:[#allocation7 + $0x8] sm:$0xff]  ;;  %vm187_vm2 = vcmask 58368   ;;  %v488_v36 = vmov 0   ;;  %s280_s25 = sshll.u32 %s584_s7, 4  ;;  %s281_s25 = int_to_ptr.hbm [resolvable:$true] %s280_s25 }
  0x16   :  { %300 = vmatpush.msra.mxu2 %v126_v1  ;;  %145 = vmatpush.msra.mxu1 %v126_v1  ;;  %v124_v5 = vld [vmem:[#allocation8 + $0x8] sm:$0xff]  ;;  %v91_v6 = vld [vmem:[#allocation7] sm:$0xff]  ;;  %v543_v9 = vld [vmem:[#allocation5 + $0x8] sm:$0xff]  ;;  %v181_v30 = vand.u32 127, %v180_v29  ;;  %s490_s7 = smov [#allocation10]   ;;  %s269_s29 = sshll.u32 %s583_s6, 4  ;;  %s270_s29 = int_to_ptr.hbm [resolvable:$true] %s269_s29 }
  0x17   :  { %116 = vmatpush.msra.mxu0 %v93_v2  ;;  %v123_v7 = vld [vmem:[#allocation8] sm:$0xff]  ;;  %v88_v8 = vld [vmem:[#allocation2] sm:$0x3]  ;;  %v545_v10 = vld [vmem:[#allocation5] sm:$0xff]  ;;  %314 = vset.pattern.permute.xlu2 %v488_v36  ;;  %s267_s26 = sshll.u32 %s490_s7, 4  ;;  %vm255_vm3 = vcmask 254976   ;;  %s268_s26 = int_to_ptr.vmem [resolvable:$true] %s267_s26 }
  0x18   :  { %301 = vmatpush.msra.mxu2 %v125_v3  ;;  %146 = vmatpush.msra.mxu1 %v125_v3  ;;  %v316_v11 = vld [vmem:[%s582_s5] ss:$0 sm:$0xff] }
  0x19   :  { %117 = vmatpush.msra.mxu0 %v92_v4  ;;  %v317_v21 = vld [vmem:[%s581_s4] ss:$0 sm:$0xff]  ;;  %313 = vset.pattern.permute.xlu1 %v488_v36  ;;  %s489_s4 = smov [#allocation11]  }
  0x1a   :  { %302 = vmatpush.msra.mxu2 %v124_v5  ;;  %147 = vmatpush.msra.mxu1 %v124_v5  ;;  %s278_s5 = sshll.u32 %s489_s4, 4  ;;  %s279_s5 = int_to_ptr.vmem [resolvable:$true] %s278_s5 }
  0x1b   :  { %118 = vmatpush.msra.mxu0 %v91_v6  ;;  %315 = vset.pattern.permute.xlu0 %v488_v36 }
  0x1c   :  { %303 = vmatpush.msra.mxu2 %v123_v7  ;;  %297 = vmatmul.msk.f32.vlgmr.msra.gmra.mxu0 %vm99_vm0, %v88_v8 }
  0x1d   :  { %299 = vmatmul.msk.f32.vlgmr.msra.gmra.mxu2 %vm99_vm0, %v543_v9  ;;  %148 = vmatpush.msra.mxu1 %v123_v7 }
  0x1e   :  { %298 = vmatmul.msk.f32.vlgmr.msra.gmra.mxu1 %vm99_vm0, %v545_v10 }
  0x99   :  { %v120_v12 = vpop.f32.mrf.mxu0 }
  0x9a   :  { %v121_v13 = vadd.f32 %v316_v11, %v120_v12 }
  0x9b   :  { %v150_v14 = vpop.f32.mrf.mxu1 }
  0x9c   :  { %v157_v15 = vrot.slane %v121_v13, 1  ;;  %v158_v16 = vperm.slane %v121_v13, 0 }
  0x9e   :  { %v162_v17 = vadd.f32 %v158_v16, %v150_v14  ;;  %v159_v18 = vperm.slane %v157_v15, 0 }
  0xa0   :  { %v153_v19 = vpop.f32.mrf.mxu2  ;;  %318 = vtanh.f32 %v162_v17 }
  0xa1   :  { %v163_v20 = vadd.f32 %v159_v18, %v153_v19 }
  0xa3   :  { %320 = vtanh.f32 %v163_v20 }
  0xa6   :  { %v319_v22 = vpop.eup %318 }
  0xa7   :  { %v170_v23 = vmul.f32 %v319_v22, %v317_v21 }
  0xa9   :  { %v172_v24 = vsel %vm99_vm0, %v170_v23, 0.0  ;;  %v321_v25 = vpop.eup %320 }
  0xaa   :  { %173 = vadd.xlane.f32.xlu0 %v172_v24  ;;  %v171_v26 = vmul.f32 %v321_v25, %v317_v21 }
  0xac   :  { %v175_v27 = vsel %vm99_vm0, %v171_v26, 0.0 }
  0xb2   :  { %176 = vadd.xlane.f32.xlu0 %v175_v27 }
 0x11d   :  { %v174_v28 = vpop.xlane.xlu0 %173 }
 0x11e   :  { %v182_v32 = vperm.slane %v174_v28, %v181_v30 }
 0x125   :  { %v177_v31 = vpop.xlane.xlu0 %176 }
 0x126   :  { %v183_v33 = vperm.slane %v177_v31, %v181_v30 }
 0x128   :  { %v185_v34 = vsel %vm184_vm1, %v183_v33, %v182_v32 }
 0x129   :  { %v188_v35 = vsel %vm187_vm2, %v185_v34, -inf }
 0x12a   :  { %189 = vmax.xlane.f32.xlu1 %v188_v35 }
 0x19d   :  { %v190_v37 = vpop.xlane.xlu1 %189 }
 0x19e   :  { %v192_v38 = vperm.slane %v190_v37, 0  ;;  %v193_v39 = vperm.slane %v190_v37, 1 }
 0x1a0   :  { %v196_v40 = vsub.f32 %v174_v28, %v192_v38  ;;  %v197_v41 = vsub.f32 %v177_v31, %v193_v39 }
 0x1a2   :  { %v198_v42 = vmul.f32 1.442695, %v196_v40  ;;  %v200_v43 = vmul.f32 1.442695, %v197_v41 }
 0x1a4   :  { %322 = vpow2.f32 %v198_v42 }
 0x1a5   :  { %324 = vpow2.f32 %v200_v43 }
 0x1aa   :  { %v323_v44 = vpop.eup %322 }
 0x1ab   :  { %v325_v45 = vpop.eup %324  ;;  %205 = vperm.xlu1 %313, %v323_v44  }
 0x1ac   :  { %208 = vperm.xlu2 %314, %v325_v45  }
 0x206   :  { %v209_v46 = vpop.permute.xlu2 %208 }
 0x207   :  { %v211_v48 = vperm.slane %v209_v46, %v181_v30 }
 0x21d   :  { %v206_v47 = vpop.permute.xlu1 %205 }
 0x21e   :  { %v210_v49 = vperm.slane %v206_v47, %v181_v30 }
 0x220   :  { %v212_v50 = vsel %vm184_vm1, %v211_v48, %v210_v49 }
 0x221   :  { %v214_v51 = vsel %vm187_vm2, %v212_v50, 0.0 }
 0x222   :  { %215 = vadd.xlane.f32.xlu2 %v214_v51 }
 0x295   :  { %v216_v52 = vpop.xlane.xlu2 %215 }
 0x296   :  { %326 = vrcp.f32 %v216_v52 }
 0x29c   :  { %v327_v53 = vpop.eup %326 }
 0x29d   :  { %v220_v54 = vperm.slane %v327_v53, 1  ;;  %v219_v55 = vperm.slane %v327_v53, 0 }
 0x29f   :  { %v224_v56 = vmul.f32 %v325_v45, %v220_v54  ;;  %v223_v57 = vmul.f32 %v323_v44, %v219_v55 }
 0x2a1   :  { %232 = vperm.xlu1 %313, %v224_v56   ;;  %227 = vperm.xlu0 %315, %v223_v57  }
 0x313   :  { %v233_v58 = vpop.permute.xlu1 %232  ;;  %v228_v59 = vpop.permute.xlu0 %227 }
 0x314   :  { %v236_v60 = vmul.f32 %v233_v58, %v543_v9  ;;  %v258_v61 = vperm.slane %v233_v58, %v181_v30  ;;  %v235_v62 = vmul.f32 %v228_v59, %v545_v10  ;;  %v257_v63 = vperm.slane %v228_v59, %v181_v30 }
 0x316   :  { %v244_v0 = vsel %vm99_vm0, %v236_v60, 0.0  ;;  %v237_v1 = vsel %vm99_vm0, %v235_v62, 0.0  ;;  %v259_v2 = vsel %vm184_vm1, %v258_v61, %v257_v63 }
 0x317   :  { %v245_v3 = vrot.slane %v244_v0, 4  ;;  %v238_v4 = vrot.slane %v237_v1, 4  ;;  %261 = vst.msk [vmem:[#allocation11] sm:$0x3] %vm187_vm2, %v259_v2 }
 0x318   :  { %283 = dma.vmem_to_hbm [thread:$0]  %s279_s5, 32, %s281_s25, [#allocation12]  }
 0x319   :  { %v246_v5 = vadd.f32 %v245_v3, %v244_v0  ;;  %v239_v6 = vadd.f32 %v238_v4, %v237_v1 }
 0x31b   :  { %v247_v7 = vrot.slane %v246_v5, 2  ;;  %v240_v8 = vrot.slane %v239_v6, 2 }
 0x31d   :  { %v248_v9 = vadd.f32 %v247_v7, %v246_v5  ;;  %v241_v10 = vadd.f32 %v240_v8, %v239_v6 }
 0x31f   :  { %v249_v11 = vrot.slane %v248_v9, 1  ;;  %v242_v12 = vrot.slane %v241_v10, 1 }
 0x321   :  { %v250_v13 = vadd.f32 %v249_v11, %v248_v9  ;;  %v243_v14 = vadd.f32 %v242_v12, %v241_v10 }
 0x323   :  { %v253_v15 = vsel %vm184_vm1, %v250_v13, %v243_v14 }
 0x324   :  { %256 = vst.msk [vmem:[#allocation10] sm:$0x3] %vm255_vm3, %v253_v15 }
 0x325   :  { %272 = dma.vmem_to_hbm [thread:$0]  %s268_s26, 32, %s270_s29, [#allocation4]  }
 0x326   :  { %478 = dma.done.wait [#allocation4], 32  }
 0x327   :  { %479 = vsyncadd [#allocation4], 4294967264 }
 0x328   :  { %480 = dma.done.wait [#allocation12], 32  }
 0x329   :  { %481 = vsyncadd [#allocation12], 4294967264 }
 0x32a   :  { %292 = vsyncpa [#allocation3], 1 }
 0x32b   :  { %293 = vsyncpa [#allocation6], 1 }
 0x32c   :  { %294 = vsyncpa [#allocation9], 1 }
 0x32d   :  { %295 = vsyncpa [#allocation4], 1 }
 0x32e   :  { %296 = vsyncpa [#allocation12], 1 }

</bundles_post_ra>
